<compile_context>
chip_gen: v7x
topology: tpu7x:2x2x1
jax: 0.10.0
libtpu: 0.0.40
codegen_flags: <defaults>
</compile_context>

<pallas_src>
import functools

import jax
import jax.numpy as jnp
from jax.experimental import pallas as pl
from jax.experimental.pallas import tpu as pltpu


_TARGET_IN_BYTES = 1 << 20      # aim for ~1 MiB of input per grid step
_VMEM_BUDGET = 24 << 20         # keep double-buffered blocks well under v7x VMEM
_MAX_UNROLL_PLANES = 16         # static per-step plane loop in the general path


# ---------------------------------------------------------------------------
# Fast path kernel: lane-dense flattened planes, one stacked permutation matmul.
# ---------------------------------------------------------------------------
def _rotate_flat_kernel(p_ref, x_ref, o_ref):
    # p_ref: (hw, 3*hw) stacked permutation matrices [P90 | P180 | P270],
    #        constant index_map -> fetched from HBM once for the whole grid.
    # x_ref: (tb, hw) block of flattened planes (lane-dense: hw % 128 == 0).
    # o_ref: (4, tb, hw) -> [identity, rot90, rot180, rot270].
    hw = x_ref.shape[-1]
    x = x_ref[...]
    # The cast only ever widens (mat dtype is f32 for non-f32/bf16 inputs and
    # x.dtype otherwise), so x's values are never rounded here.
    xc = x.astype(p_ref.dtype)
    # One wide (tb, hw) @ (hw, 3*hw) product: all three rotations from a single
    # MXU push/drain, no serial matmul chain, no intermediate casts.
    y = jnp.dot(xc, p_ref[...], preferred_element_type=jnp.float32)
    o_ref[0] = x                                     # identity quarter (exact copy)
    o_ref[1] = y[:, :hw].astype(o_ref.dtype)         # rot90
    o_ref[2] = y[:, hw:2 * hw].astype(o_ref.dtype)   # rot180
    o_ref[3] = y[:, 2 * hw:].astype(o_ref.dtype)     # rot270
    # TODO(synk): flattened rot180 is a pure lane reversal and rot270 is the
    # lane reversal of rot90; once lax.rev lowering on the lane axis is
    # confirmed on all targets this can drop 2/3 of the MXU volume (matters
    # most for f32 on v5e).
    # TODO(synk): the identity quarter is a byte-for-byte copy; it could be
    # skipped (~20% less HBM traffic) if the consumer accepted a tuple instead
    # of one concatenated tensor.


# ---------------------------------------------------------------------------
# General path kernel: a batch of planes per step, hoisted exchange matrix J.
# ---------------------------------------------------------------------------
def _rotate_plane_kernel(j_ref, x_ref, o_ref, *, planes_per_step):
    # j_ref: (n, n) exchange (anti-identity) matrix (constant index_map).
    # x_ref: (tb_p, H, W) batch of planes; o_ref: (4, tb_p, H, W).
    # Rotations are O(n) flops/element (one transpose + tiny J-matmuls), so the
    # kernel stays HBM-bound; batching planes per step amortizes the ~0.35us
    # fixed per-step overhead that dominated the old one-plane-per-step design.
    j = j_ref[...]
    for p in range(planes_per_step):              # static unroll (tb_p is small)
        xp = x_ref[p]
        xc = xp.astype(j.dtype)
        t = xc.T
        # Independent (not chained) formulations of the three rotations:
        x90 = jnp.dot(t, j, preferred_element_type=jnp.float32)    # x[n-1-k, i]
        x270 = jnp.dot(j, t, preferred_element_type=jnp.float32)   # x[k, n-1-i]
        x180 = jnp.dot(jnp.dot(j, xc), j,                          # x[n-1-i, n-1-j]
                       preferred_element_type=jnp.float32)
        o_ref[0, p] = xp
        o_ref[1, p] = x90.astype(o_ref.dtype)
        o_ref[2, p] = x180.astype(o_ref.dtype)
        o_ref[3, p] = x270.astype(o_ref.dtype)
    # TODO(synk): very large planes (multi-MiB) need spatial (H, W) tiling with
    # per-rotation outputs to stay inside v7x's 64 MiB VMEM, and the J-matmul
    # reversals should become XLU flips once lax.rev lowering is confirmed.


# ---------------------------------------------------------------------------
# Wrapper helpers.
# ---------------------------------------------------------------------------
def _pick_block_rows(n_rows, row_bytes, granule, target_bytes, max_rows=None):
    """Largest divisor of `n_rows` that is a multiple of `granule`, keeps the
    per-step input under ~target_bytes, and (when possible) leaves >= 2 grid
    steps so both v7x TensorCores get work.  Returns 0 if none exists."""
    cap = target_bytes // max(1, row_bytes)
    cap = min(cap, n_rows)
    if max_rows is not None:
        cap = min(cap, max_rows)
    best = best_multi = 0
    d = granule
    while d <= cap:
        if n_rows % d == 0:
            best = d
            if n_rows // d >= 2:
                best_multi = d
        d += granule
    return best_multi if best_multi else best


def _compiler_params(doubled_block_bytes):
    # Explicit VMEM limit: enough for the double-buffered blocks plus margin,
    # capped so it is always satisfiable on v7x (64 MiB physical VMEM) and a
    # no-op relative to defaults for small configs.
    limit = int(min(56 << 20, max(32 << 20, doubled_block_bytes * 3 // 2)))
    return pltpu.CompilerParams(dimension_semantics=("parallel",),
                                vmem_limit_bytes=limit)


def rotate(x):
    """x: (B, C, H, W) with H == W.  Returns (4B, C, H, W), matching
    torch.cat((x, rot90(x), rot180(x), rot270(x)), dim=0)."""
    B, C, H, W = x.shape
    assert H == W, "rotate requires square spatial dims (H == W)"
    BC = B * C
    n = H
    hw = H * W
    itemsize = x.dtype.itemsize

    # 8-byte dtypes (f64/int64) would be narrowed by the f32 permutation
    # matmul; keep them exact with the plain-XLA formulation instead.
    if itemsize > 4:
        # TODO(synk): wide-dtype planes could be handled exactly by bitcasting
        # to 2x 32-bit lanes; not worth it for this module.
        return rotate_reference(x)

    # Permutation-matrix dtype: native width for f32/bf16 (exact, never narrows
    # x); everything else (ints, f16) goes through f32.
    # NOTE: integer magnitudes >= 2**24 are not exactly representable in f32 and
    # would round in the rotated quarters (the identity quarter is always exact).
    if x.dtype in (jnp.float32, jnp.bfloat16):
        mat_dtype = x.dtype
    else:
        mat_dtype = jnp.float32

    # Flat (lane-dense) path only where the stacked permutation matmul is still
    # HBM-bound and its (hw, 3*hw) constant stays small: 4-byte dtypes take it
    # only at hw <= 256 (f32 @ hw=1024 is MXU-roofline-bound on v5e and the
    # 12 MiB stacked matrix strains v7x VMEM).
    use_flat = (hw % 128 == 0) and (hw <= 1024) and (hw <= 256 or itemsize <= 2)

    tb = 0
    if use_flat:
        granule = max(8, 32 // itemsize)     # packed sublanes: f32 8 / bf16 16 / i8 32
        tb = (_pick_block_rows(BC, hw * itemsize, granule, _TARGET_IN_BYTES)
              or _pick_block_rows(BC, hw * itemsize, 8, _TARGET_IN_BYTES))
        if tb == 0:
            # No multiple-of-8 divisor of BC: a full-height block is always
            # layout-legal, but only take it if it clearly fits in VMEM;
            # otherwise fall through to the plane path (always tileable).
            if 2 * 5 * BC * hw * itemsize <= _VMEM_BUDGET:
                tb = BC
            else:
                use_flat = False

    if use_flat:
        # ---------------- lane-dense fast path ----------------
        x_flat = x.reshape(BC, hw)

        # Stacked permutation matrix [P90 | P180 | P270]; out = x_flat @ Pk.
        q = jnp.arange(hw, dtype=jnp.int32)
        qi, qj = q // n, q % n
        src90 = (n - 1 - qj) * n + qi        # rot90 : out[q] = x[src90[q]]
        src180 = hw - 1 - q                  # rot180: full reversal
        src270 = qj * n + (n - 1 - qi)       # rot270

        def perm(src):
            return (q[:, None] == src[None, :]).astype(mat_dtype)

        p_stack = jnp.concatenate(
            [perm(src90), perm(src180), perm(src270)], axis=1)   # (hw, 3*hw)

        pstack_bytes = 3 * hw * hw * jnp.dtype(mat_dtype).itemsize
        doubled_bytes = 2 * (pstack_bytes + 5 * tb * hw * itemsize)

        out = pl.pallas_call(
            _rotate_flat_kernel,
            out_shape=jax.ShapeDtypeStruct((4, BC, hw), x.dtype),
            grid_spec=pltpu.PrefetchScalarGridSpec(
                num_scalar_prefetch=0,
                grid=(BC // tb,),
                in_specs=[
                    # Constant index_map -> fetched once; its (double-buffered)
                    # footprint is bounded by the hw cap above.
                    # TODO(synk): pl.Buffered(1) here if larger-hw variants are
                    # ever enabled (dead second buffer is pure VMEM waste).
                    pl.BlockSpec((hw, 3 * hw), lambda i: (0, 0)),
                    pl.BlockSpec((tb, hw), lambda i: (i, 0)),
                ],
                out_specs=pl.BlockSpec((4, tb, hw), lambda i: (0, i, 0)),
            ),
            compiler_params=_compiler_params(doubled_bytes),
        )(p_stack, x_flat)
        # (4, BC, hw) is row-major identical to (4B, C, H, W): metadata reshape.
        return out.reshape(4 * B, C, H, W)

    # ---------------- general (plane) path ----------------
    x_planes = x.reshape(BC, H, W)
    plane_bytes = hw * itemsize
    tb_p = _pick_block_rows(BC, plane_bytes, 1, _TARGET_IN_BYTES,
                            max_rows=_MAX_UNROLL_PLANES) or 1

    ar = jnp.arange(n, dtype=jnp.int32)
    j_mat = (ar[:, None] + ar[None, :] == n - 1).astype(mat_dtype)   # exchange J

    j_bytes = n * n * jnp.dtype(mat_dtype).itemsize
    doubled_bytes = 2 * (j_bytes + 5 * tb_p * plane_bytes)

    out = pl.pallas_call(
        functools.partial(_rotate_plane_kernel, planes_per_step=tb_p),
        out_shape=jax.ShapeDtypeStruct((4, BC, H, W), x.dtype),
        grid_spec=pltpu.PrefetchScalarGridSpec(
            num_scalar_prefetch=0,
            grid=(BC // tb_p,),
            in_specs=[
                pl.BlockSpec((n, n), lambda i: (0, 0)),           # J (hoisted)
                pl.BlockSpec((tb_p, H, W), lambda i: (i, 0, 0)),
            ],
            out_specs=pl.BlockSpec((4, tb_p, H, W), lambda i: (0, i, 0, 0)),
        ),
        compiler_params=_compiler_params(doubled_bytes),
    )(j_mat, x_planes)
    return out.reshape(4 * B, C, H, W)


def rotate_reference(x):
    x90 = jnp.flip(jnp.swapaxes(x, 2, 3), 3)
    x180 = jnp.flip(jnp.flip(x, 2), 3)
    x270 = jnp.flip(jnp.swapaxes(x, 2, 3), 2)
    return jnp.concatenate((x, x90, x180, x270), axis=0)


if __name__ == "__main__":
    # 1) Flat (lane-dense) fast path: the module's typical small patch size.
    B, C, H, W = 2, 4, 16, 16
    x = jax.random.normal(jax.random.PRNGKey(0), (B, C, H, W), dtype=jnp.float32)
    out = jax.block_until_ready(rotate(x))
    ref = rotate_reference(x)
    assert out.shape == (4 * B, C, H, W), out.shape
    assert jnp.allclose(out, ref, atol=1e-5, rtol=1e-5), "flat path mismatch"

    # 2) General (plane) path: spatial size whose H*W is not a multiple of 128.
    x2 = jax.random.normal(jax.random.PRNGKey(1), (2, 2, 24, 24), dtype=jnp.float32)
    out2 = jax.block_until_ready(rotate(x2))
    ref2 = rotate_reference(x2)
    assert out2.shape == (8, 2, 24, 24), out2.shape
    assert jnp.allclose(out2, ref2, atol=1e-5, rtol=1e-5), "plane path mismatch"

    print("KERNEL_OK")
</pallas_src>

<mosaic_0001>
module attributes {stable_mosaic.version = 11 : i64} {
  func.func @_rotate_flat_kernel(%arg0: i32, %arg1: memref<256x768xf32, #tpu.memory_space<vmem>>, %arg2: memref<8x256xf32, #tpu.memory_space<vmem>>, %arg3: memref<4x8x256xf32, #tpu.memory_space<vmem>>) attributes {dimension_semantics = [#tpu.dimension_semantics<parallel>], iteration_bounds = array<i64: 1>, scalar_prefetch = 0 : i64, scratch_operands = 0 : i64, tpu.core_type = #tpu.core_type<tc>, window_params = [{pipeline_mode = #tpu.pipeline_mode<synchronous>, transform_indices = @transform_0, window_bounds = array<i64: 256, 768>}, {transform_indices = @transform_1, window_bounds = array<i64: 8, 256>}, {transform_indices = @transform_2, window_bounds = array<i64: 4, 8, 256>}]} {
    %c0 = arith.constant 0 : index
    %c0_0 = arith.constant 0 : index
    %0 = vector.load %arg2[%c0, %c0_0] : memref<8x256xf32, #tpu.memory_space<vmem>>, vector<8x256xf32>
    %c0_1 = arith.constant 0 : index
    %c0_2 = arith.constant 0 : index
    %1 = vector.load %arg1[%c0_1, %c0_2] : memref<256x768xf32, #tpu.memory_space<vmem>>, vector<256x768xf32>
    %cst = arith.constant dense<0.000000e+00> : vector<8x768xf32>
    %2 = tpu.matmul %0, %1, %cst {dimension_numbers = #tpu.dot_dimension_numbers<[1], [0], [0], [1], [0, 0, 1, 1], [], []>} : vector<8x256xf32>, vector<256x768xf32>, vector<8x768xf32> -> vector<8x768xf32>
    %c0_3 = arith.constant 0 : index
    %c0_4 = arith.constant 0 : index
    %c0_5 = arith.constant 0 : index
    %3 = vector.load %arg3[%c0_3, %c0_4, %c0_5] : memref<4x8x256xf32, #tpu.memory_space<vmem>>, vector<1x8x256xf32>
    %4 = vector.shape_cast %3 : vector<1x8x256xf32> to vector<8x256xf32>
    %5 = vector.shape_cast %0 : vector<8x256xf32> to vector<1x8x256xf32>
    tpu.vector_store %arg3[%c0_3, %c0_4, %c0_5], %5 {strides = array<i32>} : memref<4x8x256xf32, #tpu.memory_space<vmem>>, vector<1x8x256xf32>,
    %6 = vector.extract_strided_slice %2 {offsets = [0, 0], sizes = [8, 256], strides = [1, 1]} : vector<8x768xf32> to vector<8x256xf32>
    %c1 = arith.constant 1 : index
    %c0_6 = arith.constant 0 : index
    %c0_7 = arith.constant 0 : index
    %7 = vector.load %arg3[%c1, %c0_6, %c0_7] : memref<4x8x256xf32, #tpu.memory_space<vmem>>, vector<1x8x256xf32>
    %8 = vector.shape_cast %7 : vector<1x8x256xf32> to vector<8x256xf32>
    %9 = vector.shape_cast %6 : vector<8x256xf32> to vector<1x8x256xf32>
    tpu.vector_store %arg3[%c1, %c0_6, %c0_7], %9 {strides = array<i32>} : memref<4x8x256xf32, #tpu.memory_space<vmem>>, vector<1x8x256xf32>,
    %10 = vector.extract_strided_slice %2 {offsets = [0, 256], sizes = [8, 256], strides = [1, 1]} : vector<8x768xf32> to vector<8x256xf32>
    %c2 = arith.constant 2 : index
    %c0_8 = arith.constant 0 : index
    %c0_9 = arith.constant 0 : index
    %11 = vector.load %arg3[%c2, %c0_8, %c0_9] : memref<4x8x256xf32, #tpu.memory_space<vmem>>, vector<1x8x256xf32>
    %12 = vector.shape_cast %11 : vector<1x8x256xf32> to vector<8x256xf32>
    %13 = vector.shape_cast %10 : vector<8x256xf32> to vector<1x8x256xf32>
    tpu.vector_store %arg3[%c2, %c0_8, %c0_9], %13 {strides = array<i32>} : memref<4x8x256xf32, #tpu.memory_space<vmem>>, vector<1x8x256xf32>,
    %14 = vector.extract_strided_slice %2 {offsets = [0, 512], sizes = [8, 256], strides = [1, 1]} : vector<8x768xf32> to vector<8x256xf32>
    %c3 = arith.constant 3 : index
    %c0_10 = arith.constant 0 : index
    %c0_11 = arith.constant 0 : index
    %15 = vector.load %arg3[%c3, %c0_10, %c0_11] : memref<4x8x256xf32, #tpu.memory_space<vmem>>, vector<1x8x256xf32>
    %16 = vector.shape_cast %15 : vector<1x8x256xf32> to vector<8x256xf32>
    %17 = vector.shape_cast %14 : vector<8x256xf32> to vector<1x8x256xf32>
    tpu.vector_store %arg3[%c3, %c0_10, %c0_11], %17 {strides = array<i32>} : memref<4x8x256xf32, #tpu.memory_space<vmem>>, vector<1x8x256xf32>,
    return
  }
  func.func @transform_0(%arg0: i32) -> (i32, i32) {
    %c0_i32 = arith.constant 0 : i32
    %c0_i32_0 = arith.constant 0 : i32
    %c0_i32_1 = arith.constant 0 : i32
    return %c0_i32, %c0_i32_0 : i32, i32
  }
  func.func @transform_1(%arg0: i32) -> (i32, i32) {
    %c0_i32 = arith.constant 0 : i32
    %c0_i32_0 = arith.constant 0 : i32
    return %arg0, %c0_i32 : i32, i32
  }
  func.func @transform_2(%arg0: i32) -> (i32, i32, i32) {
    %c0_i32 = arith.constant 0 : i32
    %c0_i32_0 = arith.constant 0 : i32
    %c0_i32_1 = arith.constant 0 : i32
    return %c0_i32, %arg0, %c0_i32_0 : i32, i32, i32
  }
}

</mosaic_0001>

<bundles_post_ra>
// kernel: tpu_custom_call.1
= control target key start
LH: loop header
LB: loop body
LE: loop exit
PB: predicated region body
PF: predicated region fallthrough
CT: control target
= control target key end

     0   :  { %7 = vsyncpa [#allocation3], 0  ;;  %s815_s0 = inlined_call_operand.hbm [shape: f32[256,768], index: 0, kind: input, shape index: {}]   ;;  %s816_s1 = inlined_call_operand.hbm [shape: f32[8,256], index: 1, kind: input, shape index: {}]   ;;  %s817_s2 = inlined_call_operand.hbm [shape: f32[4,8,256], index: 2, kind: output, shape index: {}]  }
   0x1   :  { %8 = vsyncpa [#allocation6], 0 }
   0x2   :  { %9 = vsyncpa [#allocation4], 0  ;;  %s745_s9 = smov [#allocation2]   ;;  %s673_s13 = scalar_lea.hbm %s815_s0, 24576 }
   0x3   :  { %s15_s10 = sshll.u32 %s745_s9, 4  ;;  %p674_p0 = scmp.ne.s32.totalorder %s815_s0, %s673_s13  ;;  %s16_s10 = int_to_ptr.vmem [resolvable:$true] %s15_s10 }
   0x4   :  { %p677_p1 = scmp.lt.u32.totalorder %s673_s13, %s815_s0 }
   0x6   :  { %p679_p2 = pnand %p677_p1, %p674_p0 }
   0x8   :  { %682 = shalt.err (!%p679_p2)
}
   0x9   :  { %s683_s18 = scalar_lea.vmem %s16_s10, 24576  ;;  %p688_p4 = scmp.lt.s32.totalorder %s16_s10, %s16_s10 }
   0xa   :  { %p684_p3 = scmp.ne.s32.totalorder %s16_s10, %s683_s18  ;;  %p689_p5 = scmp.lt.s32.totalorder %s683_s18, %s683_s18 }
   0xc   :  { %p690_p6 = por %p689_p5, %p688_p4 }
   0xe   :  { %p691_p7 = pnand %p690_p6, %p684_p3 }
  0x10   :  { %694 = shalt.err (!%p691_p7)
}
  0x11   :  { %s746_s19 = smov 768   ;;  %s747_s20 = smov 48  }
  0x12   :  { %21 = dma.hbm_to_vmem [thread:$0]  %s815_s0, 24576, %s16_s10, [#allocation3], %s746_s19, %s746_s19, %s747_s20  }
  0x13   :  { %s748_s23 = smov [#allocation5]   ;;  %s695_s27 = scalar_lea.hbm %s816_s1, 256 }
  0x14   :  { %s28_s24 = sshll.u32 %s748_s23, 4  ;;  %p696_p8 = scmp.ne.s32.totalorder %s816_s1, %s695_s27  ;;  %s29_s24 = int_to_ptr.vmem [resolvable:$true] %s28_s24 }
  0x15   :  { %p699_p9 = scmp.lt.u32.totalorder %s695_s27, %s816_s1 }
  0x17   :  { %p701_p10 = pnand %p699_p9, %p696_p8 }
  0x19   :  { %704 = shalt.err (!%p701_p10)
}
  0x1a   :  { %s705_s4 = scalar_lea.vmem %s29_s24, 256  ;;  %p710_p12 = scmp.lt.s32.totalorder %s29_s24, %s29_s24 }
  0x1b   :  { %p706_p11 = scmp.ne.s32.totalorder %s29_s24, %s705_s4  ;;  %p711_p13 = scmp.lt.s32.totalorder %s705_s4, %s705_s4 }
  0x1d   :  { %p712_p0 = por %p711_p13, %p710_p12 }
  0x1f   :  { %p713_p1 = pnand %p712_p0, %p706_p11 }
  0x21   :  { %716 = shalt.err (!%p713_p1)
}
  0x22   :  { %31 = dma.hbm_to_vmem [thread:$0]  %s816_s1, 256, %s29_s24, [#allocation6]  }
  0x23   :  { %739 = dma.done.wait [#allocation3], 24576  }
  0x24   :  { %740 = vsyncadd [#allocation3], 4294942720 }
  0x25   :  { %741 = dma.done.wait [#allocation6], 256  }
  0x26   :  { %742 = vsyncadd [#allocation6], 4294967040  ;;  %v41_v0 = vld [vmem:[#allocation2 + $0x8] sm:$0xff]  ;;  %v47_v1 = vld [vmem:[#allocation2 + $0x38] sm:$0xff]  ;;  %s749_s1 = smov [#allocation7]  }
  0x27   :  { %v40_v2 = vld [vmem:[#allocation2] sm:$0xff]  ;;  %v474_v3 = vpack.c.bf16 %v47_v1, %v41_v0  ;;  %v46_v4 = vld [vmem:[#allocation2 + $0x30] sm:$0xff]  ;;  %v53_v5 = vld [vmem:[#allocation2 + $0x68] sm:$0xff]  ;;  %s461_s6 = sshll.u32 %s749_s1, 4  ;;  %s462_s6 = int_to_ptr.vmem [resolvable:$true] %s461_s6 }
  0x28   :  { %v59_v6 = vld [vmem:[#allocation2 + $0x98] sm:$0xff]  ;;  %v476_v7 = vpack.c.bf16 %v46_v4, %v40_v2  ;;  %v52_v9 = vld [vmem:[#allocation2 + $0x60] sm:$0xff]  ;;  %v58_v10 = vld [vmem:[#allocation2 + $0x90] sm:$0xff]  ;;  %s717_s7 = scalar_lea.vmem %s462_s6, 1024  ;;  %p722_p3 = scmp.lt.s32.totalorder %s462_s6, %s462_s6 }
  0x29   :  { %v478_v8 = vpack.c.bf16 %v59_v6, %v53_v5  ;;  %v65_v11 = vld [vmem:[#allocation2 + $0xc8] sm:$0xff]  ;;  %475 = vmatprep.subr.bf16.mxu0 %v474_v3  ;;  %v71_v12 = vld [vmem:[#allocation2 + $0xf8] sm:$0xff]  ;;  %v480_v13 = vpack.c.bf16 %v58_v10, %v52_v9  ;;  %v64_v15 = vld [vmem:[#allocation2 + $0xc0] sm:$0xff]  ;;  %p718_p2 = scmp.ne.s32.totalorder %s462_s6, %s717_s7  ;;  %p723_p4 = scmp.lt.s32.totalorder %s717_s7, %s717_s7 }
  0x2a   :  { %477 = vmatpush1.bf16.msra.mxu0 %v476_v7  ;;  %v482_v14 = vpack.c.bf16 %v71_v12, %v65_v11  ;;  %v70_v16 = vld [vmem:[#allocation2 + $0xf0] sm:$0xff]  ;;  %v77_v17 = vld [vmem:[#allocation2 + $0x128] sm:$0xff]  ;;  %v83_v18 = vld [vmem:[#allocation2 + $0x158] sm:$0xff] }
  0x2b   :  { %479 = vmatprep.subr.bf16.mxu0 %v478_v8  ;;  %v484_v19 = vpack.c.bf16 %v70_v16, %v64_v15  ;;  %v486_v20 = vpack.c.bf16 %v83_v18, %v77_v17  ;;  %v76_v21 = vld [vmem:[#allocation2 + $0x120] sm:$0xff]  ;;  %v82_v22 = vld [vmem:[#allocation2 + $0x150] sm:$0xff]  ;;  %v89_v23 = vld [vmem:[#allocation2 + $0x188] sm:$0xff]  ;;  %p724_p5 = por %p723_p4, %p722_p3 }
  0x2c   :  { %v95_v24 = vld [vmem:[#allocation2 + $0x1b8] sm:$0xff]  ;;  %v488_v25 = vpack.c.bf16 %v82_v22, %v76_v21  ;;  %v88_v27 = vld [vmem:[#allocation2 + $0x180] sm:$0xff]  ;;  %v94_v28 = vld [vmem:[#allocation2 + $0x1b0] sm:$0xff] }
  0x2d   :  { %v490_v26 = vpack.c.bf16 %v95_v24, %v89_v23  ;;  %v101_v29 = vld [vmem:[#allocation2 + $0x1e8] sm:$0xff]  ;;  %v107_v30 = vld [vmem:[#allocation2 + $0x218] sm:$0xff]  ;;  %v492_v31 = vpack.c.bf16 %v94_v28, %v88_v27  ;;  %v100_v33 = vld [vmem:[#allocation2 + $0x1e0] sm:$0xff]  ;;  %p725_p6 = pnand %p724_p5, %p718_p2 }
  0x2e   :  { %481 = vmatpush1.bf16.msra.mxu0 %v480_v13  ;;  %v494_v32 = vpack.c.bf16 %v107_v30, %v101_v29  ;;  %v106_v34 = vld [vmem:[#allocation2 + $0x210] sm:$0xff]  ;;  %v113_v35 = vld [vmem:[#allocation2 + $0x248] sm:$0xff]  ;;  %v119_v36 = vld [vmem:[#allocation2 + $0x278] sm:$0xff] }
  0x2f   :  { %483 = vmatprep.subr.bf16.mxu0 %v482_v14  ;;  %v496_v37 = vpack.c.bf16 %v106_v34, %v100_v33  ;;  %v112_v38 = vld [vmem:[#allocation2 + $0x240] sm:$0xff]  ;;  %v118_v39 = vld [vmem:[#allocation2 + $0x270] sm:$0xff]  ;;  %v125_v40 = vld [vmem:[#allocation2 + $0x2a8] sm:$0xff]  ;;  %v498_v41 = vpack.c.bf16 %v119_v36, %v113_v35 }
  0x30   :  { %v131_v42 = vld [vmem:[#allocation2 + $0x2d8] sm:$0xff]  ;;  %v791_v43 = vld [vmem:[#allocation5 + $0x8] sm:$0xff]  ;;  %v795_v46 = vld [vmem:[#allocation5] sm:$0xff]  ;;  %v500_v50 = vpack.c.bf16 %v118_v39, %v112_v38 }
  0x31   :  { %v43_v44 = vld [vmem:[#allocation2 + $0x18] sm:$0xff]  ;;  %296 = vmatprep.mubr.f32.mxu0 %v791_v43  ;;  %446 = vst [vmem:[#allocation7 + $0x8] sm:$0xff] %v791_v43  ;;  %v49_v45 = vld [vmem:[#allocation2 + $0x48] sm:$0xff]  ;;  %v42_v47 = vld [vmem:[#allocation2 + $0x10] sm:$0xff]  ;;  %367 = vmatprep.mubr.f32.mxu1 %v791_v43  ;;  %v502_v55 = vpack.c.bf16 %v131_v42, %v125_v40 }
  0x32   :  { %485 = vmatpush1.bf16.msra.mxu0 %v484_v19  ;;  %v538_v48 = vpack.c.bf16 %v49_v45, %v43_v44  ;;  %445 = vst [vmem:[#allocation7] sm:$0xff] %v795_v46  ;;  %v48_v49 = vld [vmem:[#allocation2 + $0x40] sm:$0xff]  ;;  %v130_v52 = vld [vmem:[#allocation2 + $0x2d0] sm:$0xff]  ;;  %v55_v54 = vld [vmem:[#allocation2 + $0x78] sm:$0xff] }
  0x33   :  { %487 = vmatprep.subr.bf16.mxu0 %v486_v20  ;;  %v124_v51 = vld [vmem:[#allocation2 + $0x2a0] sm:$0xff]  ;;  %v540_v53 = vpack.c.bf16 %v48_v49, %v42_v47  ;;  %v61_v56 = vld [vmem:[#allocation2 + $0xa8] sm:$0xff]  ;;  %v54_v57 = vld [vmem:[#allocation2 + $0x70] sm:$0xff] }
  0x34   :  { %539 = vmatprep.subr.bf16.mxu1 %v538_v48  ;;  %v60_v58 = vld [vmem:[#allocation2 + $0xa0] sm:$0xff]  ;;  %v137_v59 = vld [vmem:[#allocation2 + $0x308] sm:$0xff]  ;;  %v143_v60 = vld [vmem:[#allocation2 + $0x338] sm:$0xff]  ;;  %v542_v61 = vpack.c.bf16 %v61_v56, %v55_v54  ;;  %v504_v1 = vpack.c.bf16 %v130_v52, %v124_v51 }
  0x35   :  { %541 = vmatpush1.bf16.msra.mxu1 %v540_v53  ;;  %v544_v62 = vpack.c.bf16 %v60_v58, %v54_v57  ;;  %v67_v63 = vld [vmem:[#allocation2 + $0xd8] sm:$0xff]  ;;  %v73_v0 = vld [vmem:[#allocation2 + $0x108] sm:$0xff]  ;;  %v66_v3 = vld [vmem:[#allocation2 + $0xd0] sm:$0xff]  ;;  %v506_v5 = vpack.c.bf16 %v143_v60, %v137_v59 }
  0x36   :  { %489 = vmatpush1.bf16.msra.mxu0 %v488_v25  ;;  %543 = vmatprep.subr.bf16.mxu1 %v542_v61  ;;  %v546_v2 = vpack.c.bf16 %v73_v0, %v67_v63  ;;  %v72_v4 = vld [vmem:[#allocation2 + $0x100] sm:$0xff]  ;;  %v142_v7 = vld [vmem:[#allocation2 + $0x330] sm:$0xff]  ;;  %v149_v8 = vld [vmem:[#allocation2 + $0x368] sm:$0xff] }
  0x37   :  { %491 = vmatprep.subr.bf16.mxu0 %v490_v26  ;;  %v136_v6 = vld [vmem:[#allocation2 + $0x300] sm:$0xff]  ;;  %v155_v9 = vld [vmem:[#allocation2 + $0x398] sm:$0xff]  ;;  %v548_v10 = vpack.c.bf16 %v72_v4, %v66_v3  ;;  %v85_v12 = vld [vmem:[#allocation2 + $0x168] sm:$0xff] }
  0x38   :  { %v79_v11 = vld [vmem:[#allocation2 + $0x138] sm:$0xff]  ;;  %v78_v14 = vld [vmem:[#allocation2 + $0x130] sm:$0xff]  ;;  %v84_v15 = vld [vmem:[#allocation2 + $0x160] sm:$0xff]  ;;  %v508_v16 = vpack.c.bf16 %v142_v7, %v136_v6  ;;  %v510_v18 = vpack.c.bf16 %v155_v9, %v149_v8 }
  0x39   :  { %545 = vmatpush1.bf16.msra.mxu1 %v544_v62  ;;  %v550_v13 = vpack.c.bf16 %v85_v12, %v79_v11  ;;  %v91_v17 = vld [vmem:[#allocation2 + $0x198] sm:$0xff]  ;;  %v148_v19 = vld [vmem:[#allocation2 + $0x360] sm:$0xff]  ;;  %v154_v20 = vld [vmem:[#allocation2 + $0x390] sm:$0xff]  ;;  %v552_v24 = vpack.c.bf16 %v84_v15, %v78_v14 }
  0x3a   :  { %493 = vmatpush1.bf16.msra.mxu0 %v492_v31  ;;  %547 = vmatprep.subr.bf16.mxu1 %v546_v2  ;;  %v97_v21 = vld [vmem:[#allocation2 + $0x1c8] sm:$0xff]  ;;  %v167_v23 = vld [vmem:[#allocation2 + $0x3f8] sm:$0xff]  ;;  %v90_v26 = vld [vmem:[#allocation2 + $0x190] sm:$0xff]  ;;  %v512_v28 = vpack.c.bf16 %v154_v20, %v148_v19 }
  0x3b   :  { %495 = vmatprep.subr.bf16.mxu0 %v494_v32  ;;  %v161_v22 = vld [vmem:[#allocation2 + $0x3c8] sm:$0xff]  ;;  %v554_v25 = vpack.c.bf16 %v97_v21, %v91_v17  ;;  %v96_v27 = vld [vmem:[#allocation2 + $0x1c0] sm:$0xff]  ;;  %v103_v29 = vld [vmem:[#allocation2 + $0x1f8] sm:$0xff] }
  0x3c   :  { %v109_v30 = vld [vmem:[#allocation2 + $0x228] sm:$0xff]  ;;  %v514_v31 = vpack.c.bf16 %v167_v23, %v161_v22  ;;  %v160_v32 = vld [vmem:[#allocation2 + $0x3c0] sm:$0xff]  ;;  %v166_v33 = vld [vmem:[#allocation2 + $0x3f0] sm:$0xff]  ;;  %v556_v36 = vpack.c.bf16 %v96_v27, %v90_v26 }
  0x3d   :  { %549 = vmatpush1.bf16.msra.mxu1 %v548_v10  ;;  %v173_v34 = vld [vmem:[#allocation2 + $0x428] sm:$0xff]  ;;  %v179_v35 = vld [vmem:[#allocation2 + $0x458] sm:$0xff]  ;;  %v102_v38 = vld [vmem:[#allocation2 + $0x1f0] sm:$0xff]  ;;  %v516_v40 = vpack.c.bf16 %v166_v33, %v160_v32 }
  0x3e   :  { %497 = vmatpush1.bf16.msra.mxu0 %v496_v37  ;;  %551 = vmatprep.subr.bf16.mxu1 %v550_v13  ;;  %v558_v37 = vpack.c.bf16 %v109_v30, %v103_v29  ;;  %v108_v39 = vld [vmem:[#allocation2 + $0x220] sm:$0xff]  ;;  %v121_v42 = vld [vmem:[#allocation2 + $0x288] sm:$0xff]  ;;  %v518_v44 = vpack.c.bf16 %v179_v35, %v173_v34  ;;  %v178_v47 = vld [vmem:[#allocation2 + $0x450] sm:$0xff] }
  0x3f   :  { %499 = vmatprep.subr.bf16.mxu0 %v498_v41  ;;  %v115_v41 = vld [vmem:[#allocation2 + $0x258] sm:$0xff]  ;;  %v172_v45 = vld [vmem:[#allocation2 + $0x420] sm:$0xff]  ;;  %v185_v48 = vld [vmem:[#allocation2 + $0x488] sm:$0xff] }
  0x40   :  { %v191_v49 = vld [vmem:[#allocation2 + $0x4b8] sm:$0xff]  ;;  %v562_v51 = vpack.c.bf16 %v121_v42, %v115_v41  ;;  %v114_v52 = vld [vmem:[#allocation2 + $0x250] sm:$0xff]  ;;  %v120_v53 = vld [vmem:[#allocation2 + $0x280] sm:$0xff]  ;;  %v520_v54 = vpack.c.bf16 %v178_v47, %v172_v45 }
  0x41   :  { %553 = vmatpush1.bf16.msra.mxu1 %v552_v24  ;;  %v133_v56 = vld [vmem:[#allocation2 + $0x2e8] sm:$0xff]  ;;  %v522_v57 = vpack.c.bf16 %v191_v49, %v185_v48  ;;  %v184_v58 = vld [vmem:[#allocation2 + $0x480] sm:$0xff]  ;;  %v190_v59 = vld [vmem:[#allocation2 + $0x4b0] sm:$0xff]  ;;  %v564_v62 = vpack.c.bf16 %v120_v53, %v114_v52 }
  0x42   :  { %501 = vmatpush1.bf16.msra.mxu0 %v500_v50  ;;  %555 = vmatprep.subr.bf16.mxu1 %v554_v25  ;;  %v560_v50 = vpack.c.bf16 %v108_v39, %v102_v38  ;;  %v197_v60 = vld [vmem:[#allocation2 + $0x4e8] sm:$0xff]  ;;  %v203_v61 = vld [vmem:[#allocation2 + $0x518] sm:$0xff]  ;;  %v126_v0 = vld [vmem:[#allocation2 + $0x2b0] sm:$0xff]  ;;  %v524_v2 = vpack.c.bf16 %v190_v59, %v184_v58 }
  0x43   :  { %503 = vmatprep.subr.bf16.mxu0 %v502_v55  ;;  %v127_v55 = vld [vmem:[#allocation2 + $0x2b8] sm:$0xff]  ;;  %v145_v4 = vld [vmem:[#allocation2 + $0x348] sm:$0xff]  ;;  %v196_v6 = vld [vmem:[#allocation2 + $0x4e0] sm:$0xff] }
  0x44   :  { %v566_v63 = vpack.c.bf16 %v133_v56, %v127_v55  ;;  %v139_v3 = vld [vmem:[#allocation2 + $0x318] sm:$0xff]  ;;  %v202_v7 = vld [vmem:[#allocation2 + $0x510] sm:$0xff]  ;;  %v209_v8 = vld [vmem:[#allocation2 + $0x548] sm:$0xff] }
  0x45   :  { %557 = vmatpush1.bf16.msra.mxu1 %v556_v36  ;;  %v215_v9 = vld [vmem:[#allocation2 + $0x578] sm:$0xff]  ;;  %v570_v11 = vpack.c.bf16 %v145_v4, %v139_v3  ;;  %v138_v12 = vld [vmem:[#allocation2 + $0x310] sm:$0xff]  ;;  %v144_v13 = vld [vmem:[#allocation2 + $0x340] sm:$0xff]  ;;  %v528_v14 = vpack.c.bf16 %v202_v7, %v196_v6 }
  0x46   :  { %505 = vmatpush1.bf16.msra.mxu0 %v504_v1  ;;  %559 = vmatprep.subr.bf16.mxu1 %v558_v37  ;;  %v132_v1 = vld [vmem:[#allocation2 + $0x2e0] sm:$0xff]  ;;  %v151_v15 = vld [vmem:[#allocation2 + $0x378] sm:$0xff]  ;;  %v530_v17 = vpack.c.bf16 %v215_v9, %v209_v8  ;;  %v214_v19 = vld [vmem:[#allocation2 + $0x570] sm:$0xff]  ;;  %v572_v22 = vpack.c.bf16 %v144_v13, %v138_v12 }
  0x47   :  { %507 = vmatprep.subr.bf16.mxu0 %v506_v5  ;;  %v526_v5 = vpack.c.bf16 %v203_v61, %v197_v60  ;;  %v568_v10 = vpack.c.bf16 %v132_v1, %v126_v0  ;;  %v221_v20 = vld [vmem:[#allocation2 + $0x5a8] sm:$0xff]  ;;  %v227_v21 = vld [vmem:[#allocation2 + $0x5d8] sm:$0xff]  ;;  %v150_v24 = vld [vmem:[#allocation2 + $0x370] sm:$0xff] }
  0x48   :  { %v156_v25 = vld [vmem:[#allocation2 + $0x3a0] sm:$0xff]  ;;  %v163_v27 = vld [vmem:[#allocation2 + $0x3d8] sm:$0xff]  ;;  %v534_v29 = vpack.c.bf16 %v227_v21, %v221_v20  ;;  %v45_v32 = vld [vmem:[#allocation2 + $0x28] sm:$0xff] }
  0x49   :  { %561 = vmatpush1.bf16.msra.mxu1 %v560_v50  ;;  %v220_v30 = vld [vmem:[#allocation2 + $0x5a0] sm:$0xff]  ;;  %v51_v33 = vld [vmem:[#allocation2 + $0x58] sm:$0xff]  ;;  %v576_v34 = vpack.c.bf16 %v156_v25, %v150_v24  ;;  %v162_v36 = vld [vmem:[#allocation2 + $0x3d0] sm:$0xff] }
  0x4a   :  { %509 = vmatpush1.bf16.msra.mxu0 %v508_v16  ;;  %563 = vmatprep.subr.bf16.mxu1 %v562_v51  ;;  %v157_v16 = vld [vmem:[#allocation2 + $0x3a8] sm:$0xff]  ;;  %v168_v37 = vld [vmem:[#allocation2 + $0x400] sm:$0xff]  ;;  %v175_v39 = vld [vmem:[#allocation2 + $0x438] sm:$0xff]  ;;  %v602_v41 = vpack.c.bf16 %v51_v33, %v45_v32 }
  0x4b   :  { %511 = vmatprep.subr.bf16.mxu0 %v510_v18  ;;  %v208_v18 = vld [vmem:[#allocation2 + $0x540] sm:$0xff]  ;;  %v574_v23 = vpack.c.bf16 %v157_v16, %v151_v15  ;;  %v57_v45 = vld [vmem:[#allocation2 + $0x88] sm:$0xff]  ;;  %v63_v47 = vld [vmem:[#allocation2 + $0xb8] sm:$0xff]  ;;  %v580_v48 = vpack.c.bf16 %v168_v37, %v162_v36 }
  0x4c   :  { %v532_v26 = vpack.c.bf16 %v214_v19, %v208_v18  ;;  %v44_v42 = vld [vmem:[#allocation2 + $0x20] sm:$0xff]  ;;  %v174_v50 = vld [vmem:[#allocation2 + $0x430] sm:$0xff]  ;;  %v187_v53 = vld [vmem:[#allocation2 + $0x498] sm:$0xff]  ;;  %v606_v55 = vpack.c.bf16 %v63_v47, %v57_v45 }
  0x4d   :  { %565 = vmatpush1.bf16.msra.mxu1 %v564_v62  ;;  %v180_v51 = vld [vmem:[#allocation2 + $0x460] sm:$0xff]  ;;  %v69_v58 = vld [vmem:[#allocation2 + $0xe8] sm:$0xff]  ;;  %v75_v59 = vld [vmem:[#allocation2 + $0x118] sm:$0xff] }
  0x4e   :  { %513 = vmatpush1.bf16.msra.mxu0 %v512_v28  ;;  %567 = vmatprep.subr.bf16.mxu1 %v566_v63  ;;  %v169_v28 = vld [vmem:[#allocation2 + $0x408] sm:$0xff]  ;;  %v56_v56 = vld [vmem:[#allocation2 + $0x80] sm:$0xff]  ;;  %v584_v60 = vpack.c.bf16 %v180_v51, %v174_v50  ;;  %v186_v62 = vld [vmem:[#allocation2 + $0x490] sm:$0xff]  ;;  %v610_v3 = vpack.c.bf16 %v75_v59, %v69_v58 }
  0x4f   :  { %515 = vmatprep.subr.bf16.mxu0 %v514_v31  ;;  %v226_v31 = vld [vmem:[#allocation2 + $0x5d0] sm:$0xff]  ;;  %v578_v35 = vpack.c.bf16 %v169_v28, %v163_v27  ;;  %v192_v63 = vld [vmem:[#allocation2 + $0x4c0] sm:$0xff]  ;;  %v199_v1 = vld [vmem:[#allocation2 + $0x4f8] sm:$0xff] }
  0x50   :  { %v536_v38 = vpack.c.bf16 %v226_v31, %v220_v30  ;;  %v68_v4 = vld [vmem:[#allocation2 + $0xe0] sm:$0xff]  ;;  %v81_v6 = vld [vmem:[#allocation2 + $0x148] sm:$0xff]  ;;  %v87_v7 = vld [vmem:[#allocation2 + $0x178] sm:$0xff]  ;;  %v588_v8 = vpack.c.bf16 %v192_v63, %v186_v62 }
  0x51   :  { %569 = vmatpush1.bf16.msra.mxu1 %v568_v10  ;;  %v198_v10 = vld [vmem:[#allocation2 + $0x4f0] sm:$0xff]  ;;  %v211_v13 = vld [vmem:[#allocation2 + $0x558] sm:$0xff]  ;;  %v614_v15 = vpack.c.bf16 %v87_v7, %v81_v6  ;;  %v80_v16 = vld [vmem:[#allocation2 + $0x140] sm:$0xff] }
  0x52   :  { %517 = vmatpush1.bf16.msra.mxu0 %v516_v40  ;;  %571 = vmatprep.subr.bf16.mxu1 %v570_v11  ;;  %v181_v40 = vld [vmem:[#allocation2 + $0x468] sm:$0xff]  ;;  %v204_v11 = vld [vmem:[#allocation2 + $0x520] sm:$0xff]  ;;  %v99_v18 = vld [vmem:[#allocation2 + $0x1d8] sm:$0xff] }
  0x53   :  { %519 = vmatprep.subr.bf16.mxu0 %v518_v44  ;;  %v50_v44 = vld [vmem:[#allocation2 + $0x50] sm:$0xff]  ;;  %v582_v49 = vpack.c.bf16 %v181_v40, %v175_v39  ;;  %v592_v19 = vpack.c.bf16 %v204_v11, %v198_v10  ;;  %v223_v24 = vld [vmem:[#allocation2 + $0x5b8] sm:$0xff]  ;;  %v229_v25 = vld [vmem:[#allocation2 + $0x5e8] sm:$0xff] }
  0x54   :  { %v604_v52 = vpack.c.bf16 %v50_v44, %v44_v42  ;;  %v210_v21 = vld [vmem:[#allocation2 + $0x550] sm:$0xff]  ;;  %v92_v27 = vld [vmem:[#allocation2 + $0x1a0] sm:$0xff]  ;;  %v111_v30 = vld [vmem:[#allocation2 + $0x238] sm:$0xff]  ;;  %v598_v32 = vpack.c.bf16 %v229_v25, %v223_v24 }
  0x55   :  { %573 = vmatpush1.bf16.msra.mxu1 %v572_v22  ;;  %v216_v22 = vld [vmem:[#allocation2 + $0x580] sm:$0xff]  ;;  %v98_v28 = vld [vmem:[#allocation2 + $0x1d0] sm:$0xff]  ;;  %v117_v39 = vld [vmem:[#allocation2 + $0x268] sm:$0xff] }
  0x56   :  { %521 = vmatpush1.bf16.msra.mxu0 %v520_v54  ;;  %575 = vmatprep.subr.bf16.mxu1 %v574_v23  ;;  %v193_v54 = vld [vmem:[#allocation2 + $0x4c8] sm:$0xff]  ;;  %v596_v31 = vpack.c.bf16 %v216_v22, %v210_v21  ;;  %v222_v33 = vld [vmem:[#allocation2 + $0x5b0] sm:$0xff]  ;;  %v104_v37 = vld [vmem:[#allocation2 + $0x200] sm:$0xff] }
  0x57   :  { %523 = vmatprep.subr.bf16.mxu0 %v522_v57  ;;  %v62_v57 = vld [vmem:[#allocation2 + $0xb0] sm:$0xff]  ;;  %v586_v61 = vpack.c.bf16 %v193_v54, %v187_v53  ;;  %v123_v40 = vld [vmem:[#allocation2 + $0x298] sm:$0xff]  ;;  %v116_v45 = vld [vmem:[#allocation2 + $0x260] sm:$0xff] }
  0x58   :  { %v608_v0 = vpack.c.bf16 %v62_v57, %v56_v56  ;;  %v626_v44 = vpack.c.bf16 %v123_v40, %v117_v39  ;;  %v122_v47 = vld [vmem:[#allocation2 + $0x290] sm:$0xff]  ;;  %v141_v54 = vld [vmem:[#allocation2 + $0x328] sm:$0xff]  ;;  %v140_v58 = vld [vmem:[#allocation2 + $0x320] sm:$0xff] }
  0x59   :  { %577 = vmatpush1.bf16.msra.mxu1 %v576_v34  ;;  %v228_v34 = vld [vmem:[#allocation2 + $0x5e0] sm:$0xff]  ;;  %v628_v50 = vpack.c.bf16 %v122_v47, %v116_v45  ;;  %v134_v53 = vld [vmem:[#allocation2 + $0x2f0] sm:$0xff]  ;;  %v213_v25 = vld [vmem:[#allocation2 + $0x568] sm:$0xff] }
  0x5a   :  { %525 = vmatpush1.bf16.msra.mxu0 %v524_v2  ;;  %579 = vmatprep.subr.bf16.mxu1 %v578_v35  ;;  %v205_v2 = vld [vmem:[#allocation2 + $0x528] sm:$0xff]  ;;  %v620_v35 = vpack.c.bf16 %v98_v28, %v92_v27  ;;  %v146_v59 = vld [vmem:[#allocation2 + $0x350] sm:$0xff]  ;;  %v164_v6 = vld [vmem:[#allocation2 + $0x3e0] sm:$0xff] }
  0x5b   :  { %527 = vmatprep.subr.bf16.mxu0 %v526_v5  ;;  %v74_v5 = vld [vmem:[#allocation2 + $0x110] sm:$0xff]  ;;  %v590_v9 = vpack.c.bf16 %v205_v2, %v199_v1  ;;  %v636_v62 = vpack.c.bf16 %v146_v59, %v140_v58  ;;  %v165_v2 = vld [vmem:[#allocation2 + $0x3e8] sm:$0xff] }
  0x5c   :  { %v612_v12 = vpack.c.bf16 %v74_v5, %v68_v4  ;;  %v158_v1 = vld [vmem:[#allocation2 + $0x3b0] sm:$0xff] }
  0x5d   :  { %581 = vmatpush1.bf16.msra.mxu1 %v580_v48  ;;  %v129_v48 = vld [vmem:[#allocation2 + $0x2c8] sm:$0xff]  ;;  %v170_v7 = vld [vmem:[#allocation2 + $0x410] sm:$0xff] }
  0x5e   :  { %529 = vmatpush1.bf16.msra.mxu0 %v528_v14  ;;  %583 = vmatprep.subr.bf16.mxu1 %v582_v49  ;;  %v217_v14 = vld [vmem:[#allocation2 + $0x588] sm:$0xff]  ;;  %v135_v49 = vld [vmem:[#allocation2 + $0x2f8] sm:$0xff]  ;;  %v644_v10 = vpack.c.bf16 %v170_v7, %v164_v6  ;;  %v206_v24 = vld [vmem:[#allocation2 + $0x530] sm:$0xff] }
  0x5f   :  { %531 = vmatprep.subr.bf16.mxu0 %v530_v17  ;;  %v93_v17 = vld [vmem:[#allocation2 + $0x1a8] sm:$0xff]  ;;  %v594_v20 = vpack.c.bf16 %v217_v14, %v211_v13  ;;  %v630_v51 = vpack.c.bf16 %v135_v49, %v129_v48  ;;  %v182_v13 = vld [vmem:[#allocation2 + $0x470] sm:$0xff] }
  0x60   :  { %v189_v14 = vld [vmem:[#allocation2 + $0x4a8] sm:$0xff] }
  0x61   :  { %585 = vmatpush1.bf16.msra.mxu1 %v584_v60  ;;  %v153_v60 = vld [vmem:[#allocation2 + $0x388] sm:$0xff] }
  0x62   :  { %533 = vmatpush1.bf16.msra.mxu0 %v532_v26  ;;  %587 = vmatprep.subr.bf16.mxu1 %v586_v61  ;;  %v618_v26 = vpack.c.bf16 %v99_v18, %v93_v17  ;;  %v159_v61 = vld [vmem:[#allocation2 + $0x3b8] sm:$0xff]  ;;  %v188_v17 = vld [vmem:[#allocation2 + $0x4a0] sm:$0xff]  ;;  %v194_v18 = vld [vmem:[#allocation2 + $0x4d0] sm:$0xff] }
  0x63   :  { %535 = vmatprep.subr.bf16.mxu0 %v534_v29  ;;  %v105_v29 = vld [vmem:[#allocation2 + $0x208] sm:$0xff]  ;;  %v638_v63 = vpack.c.bf16 %v159_v61, %v153_v60  ;;  %v652_v21 = vpack.c.bf16 %v194_v18, %v188_v17 }
  0x64   :  { %v622_v36 = vpack.c.bf16 %v111_v30, %v105_v29  ;;  %v212_v29 = vld [vmem:[#allocation2 + $0x560] sm:$0xff]  ;;  %v218_v30 = vld [vmem:[#allocation2 + $0x590] sm:$0xff] }
  0x65   :  { %589 = vmatpush1.bf16.msra.mxu1 %v588_v8  ;;  %v177_v8 = vld [vmem:[#allocation2 + $0x448] sm:$0xff] }
  0x66   :  { %537 = vmatpush1.bf16.msra.mxu0 %v536_v38  ;;  %591 = vmatprep.subr.bf16.mxu1 %v590_v9  ;;  %v110_v38 = vld [vmem:[#allocation2 + $0x230] sm:$0xff]  ;;  %v183_v9 = vld [vmem:[#allocation2 + $0x478] sm:$0xff] }
  0x67   :  { %603 = vmatprep.subr.bf16.mxu0 %v602_v41  ;;  %v600_v41 = vpack.c.bf16 %v228_v34, %v222_v33  ;;  %v624_v42 = vpack.c.bf16 %v110_v38, %v104_v37  ;;  %v646_v11 = vpack.c.bf16 %v183_v9, %v177_v8  ;;  %v660_v33 = vpack.c.bf16 %v218_v30, %v212_v29 }
  0x69   :  { %297 = vmatmul.mubr.f32.vlgmr.msra.gmra.mrb[0].mxu0 %v795_v46  ;;  %593 = vmatpush1.bf16.msra.mxu1 %v592_v19  ;;  %v201_v19 = vld [vmem:[#allocation2 + $0x508] sm:$0xff] }
  0x6a   :  { %605 = vmatpush1.bf16.msra.mxu0 %v604_v52  ;;  %438 = vmatprep.mubr.f32.mxu0 %v791_v43  ;;  %v86_v43 = vld [vmem:[#allocation2 + $0x170] sm:$0xff]  ;;  %v128_v52 = vld [vmem:[#allocation2 + $0x2c0] sm:$0xff] }
  0x6b   :  { %607 = vmatprep.subr.bf16.mxu0 %v606_v55  ;;  %v616_v23 = vpack.c.bf16 %v86_v43, %v80_v16  ;;  %595 = vmatprep.subr.bf16.mxu1 %v594_v20  ;;  %v147_v55 = vld [vmem:[#allocation2 + $0x358] sm:$0xff]  ;;  %v632_v56 = vpack.c.bf16 %v134_v53, %v128_v52 }
  0x6c   :  { %v634_v57 = vpack.c.bf16 %v147_v55, %v141_v54  ;;  %v207_v20 = vld [vmem:[#allocation2 + $0x538] sm:$0xff] }
  0x6d   :  { %597 = vmatpush1.bf16.msra.mxu1 %v596_v31  ;;  %v654_v22 = vpack.c.bf16 %v207_v20, %v201_v19  ;;  %v225_v31 = vld [vmem:[#allocation2 + $0x5c8] sm:$0xff] }
  0x6e   :  { %609 = vmatpush1.bf16.msra.mxu0 %v608_v0  ;;  %599 = vmatprep.subr.bf16.mxu1 %v598_v32  ;;  %v152_v0 = vld [vmem:[#allocation2 + $0x380] sm:$0xff]  ;;  %v231_v32 = vld [vmem:[#allocation2 + $0x5f8] sm:$0xff] }
  0x6f   :  { %611 = vmatprep.subr.bf16.mxu0 %v610_v3  ;;  %v171_v3 = vld [vmem:[#allocation2 + $0x418] sm:$0xff]  ;;  %v640_v4 = vpack.c.bf16 %v158_v1, %v152_v0  ;;  %v662_v34 = vpack.c.bf16 %v231_v32, %v225_v31 }
  0x70   :  { %v642_v5 = vpack.c.bf16 %v171_v3, %v165_v2 }
  0x71   :  { %601 = vmatpush1.bf16.msra.mxu1 %v600_v41 }
  0x72   :  { %613 = vmatpush1.bf16.msra.mxu0 %v612_v12  ;;  %v176_v12 = vld [vmem:[#allocation2 + $0x440] sm:$0xff] }
  0x73   :  { %615 = vmatprep.subr.bf16.mxu0 %v614_v15  ;;  %v195_v15 = vld [vmem:[#allocation2 + $0x4d8] sm:$0xff]  ;;  %v648_v16 = vpack.c.bf16 %v182_v13, %v176_v12 }
  0x74   :  { %368 = vmatmul.mubr.f32.vlgmr.msra.gmra.mrb[0].mxu1 %v795_v46  ;;  %v650_v43 = vpack.c.bf16 %v195_v15, %v189_v14 }
  0x76   :  { %617 = vmatpush1.bf16.msra.mxu0 %v616_v23  ;;  %v200_v23 = vld [vmem:[#allocation2 + $0x500] sm:$0xff] }
  0x77   :  { %619 = vmatprep.subr.bf16.mxu0 %v618_v26  ;;  %v219_v26 = vld [vmem:[#allocation2 + $0x598] sm:$0xff]  ;;  %v656_v27 = vpack.c.bf16 %v206_v24, %v200_v23 }
  0x78   :  { %v658_v28 = vpack.c.bf16 %v219_v26, %v213_v25 }
  0x7a   :  { %621 = vmatpush1.bf16.msra.mxu0 %v620_v35  ;;  %v224_v35 = vld [vmem:[#allocation2 + $0x5c0] sm:$0xff] }
  0x7b   :  { %623 = vmatprep.subr.bf16.mxu0 %v622_v36  ;;  %v230_v36 = vld [vmem:[#allocation2 + $0x5f0] sm:$0xff] }
  0x7c   :  { %v664_v37 = vpack.c.bf16 %v230_v36, %v224_v35 }
  0x7e   :  { %625 = vmatpush1.bf16.msra.mxu0 %v624_v42 }
  0x7f   :  { %627 = vmatprep.subr.bf16.mxu0 %v626_v44 }
  0x82   :  { %629 = vmatpush1.bf16.msra.mxu0 %v628_v50 }
  0x83   :  { %631 = vmatprep.subr.bf16.mxu0 %v630_v51 }
  0x86   :  { %633 = vmatpush1.bf16.msra.mxu0 %v632_v56 }
  0x87   :  { %635 = vmatprep.subr.bf16.mxu0 %v634_v57 }
  0x8a   :  { %637 = vmatpush1.bf16.msra.mxu0 %v636_v62 }
  0x8b   :  { %639 = vmatprep.subr.bf16.mxu0 %v638_v63 }
  0x8e   :  { %641 = vmatpush1.bf16.msra.mxu0 %v640_v4 }
  0x8f   :  { %643 = vmatprep.subr.bf16.mxu0 %v642_v5 }
  0x92   :  { %645 = vmatpush1.bf16.msra.mxu0 %v644_v10 }
  0x93   :  { %647 = vmatprep.subr.bf16.mxu0 %v646_v11 }
  0x96   :  { %649 = vmatpush1.bf16.msra.mxu0 %v648_v16 }
  0x97   :  { %651 = vmatprep.subr.bf16.mxu0 %v650_v43 }
  0x9a   :  { %653 = vmatpush1.bf16.msra.mxu0 %v652_v21 }
  0x9b   :  { %655 = vmatprep.subr.bf16.mxu0 %v654_v22 }
  0x9e   :  { %657 = vmatpush1.bf16.msra.mxu0 %v656_v27 }
  0x9f   :  { %659 = vmatprep.subr.bf16.mxu0 %v658_v28 }
  0xa2   :  { %661 = vmatpush1.bf16.msra.mxu0 %v660_v33 }
  0xa3   :  { %663 = vmatprep.subr.bf16.mxu0 %v662_v34 }
  0xa6   :  { %665 = vmatpush1.bf16.msra.mxu0 %v664_v37 }
  0xa9   :  { %439 = vmatmul.mubr.f32.vlgmr.msra.gmra.mrb[2].mxu0 %v795_v46 }
 0x13c   :  { %v298_v38 = vpop.f32.mrb[0].mxu0 }
 0x13d   :  { %448 = vst [vmem:[#allocation7 + $0x10] sm:$0xff] %v298_v38  ;;  %v300_v39 = vpop.f32.mrb[1].mxu0 }
 0x13e   :  { %449 = vst [vmem:[#allocation7 + $0x18] sm:$0xff] %v300_v39 }
 0x147   :  { %v369_v40 = vpop.f32.mrb[0].mxu1 }
 0x148   :  { %451 = vst [vmem:[#allocation7 + $0x20] sm:$0xff] %v369_v40  ;;  %v371_v41 = vpop.f32.mrb[1].mxu1 }
 0x149   :  { %452 = vst [vmem:[#allocation7 + $0x28] sm:$0xff] %v371_v41 }
 0x17c   :  { %v440_v42 = vpop.f32.mrb[2].mxu0 }
 0x17d   :  { %454 = vst [vmem:[#allocation7 + $0x30] sm:$0xff] %v440_v42  ;;  %v442_v44 = vpop.f32.mrb[3].mxu0 }
 0x17e   :  { %455 = vst [vmem:[#allocation7 + $0x38] sm:$0xff] %v442_v44 }
 0x17f   :  { %728 = shalt.err (!%p725_p6)
}
 0x180   :  { %s729_s10 = scalar_lea.hbm %s817_s2, 1024 }
 0x181   :  { %p730_p7 = scmp.ne.s32.totalorder %s817_s2, %s729_s10  ;;  %p733_p8 = scmp.lt.u32.totalorder %s729_s10, %s817_s2 }
 0x183   :  { %p735_p9 = pnand %p733_p8, %p730_p7 }
 0x185   :  { %738 = shalt.err (!%p735_p9)
}
 0x186   :  { %s750_s15 = smov 256   ;;  %s751_s16 = smov 16  }
 0x187   :  { %467 = dma.vmem_to_hbm [thread:$0]  %s462_s6, 1024, %s817_s2, [#allocation4], %s750_s15, %s750_s15, %s751_s16  }
 0x188   :  { %743 = dma.done.wait [#allocation4], 1024  }
 0x189   :  { %744 = vsyncadd [#allocation4], 4294966272 }
 0x18a   :  { %471 = vsyncpa [#allocation3], 1 }
 0x18b   :  { %472 = vsyncpa [#allocation6], 1 }
 0x18c   :  { %473 = vsyncpa [#allocation4], 1 }

</bundles_post_ra>
